<compile_context>
chip_gen: v6e
topology: v6e:2x2x1
jax: 0.10.0
libtpu: 0.0.40
codegen_flags: <defaults>
</compile_context>

<pallas_src>
import math
import numpy as np
import jax
import jax.numpy as jnp
from jax import lax
from jax.experimental import pallas as pl
from jax.experimental.pallas import tpu as pltpu

MAX_HIST = 10  # the torch forward only attends over the last 10 predictions


# --------------------------------------------------------------------------
# Host-side schedule construction (structural reproduction of the torch queue)
# --------------------------------------------------------------------------
def build_schedule(edge_index, starts, num_nodes):
    src, dst = edge_index
    nbs = {n: set() for n in range(num_nodes)}
    for s, d in zip(src, dst):
        nbs[int(s)].add(int(d))
        nbs[int(d)].add(int(s))
    queue = [(i, i) for i in range(num_nodes) if starts[i]]   # slot i == first_message[i]
    counts = [1] * num_nodes                                   # predictions[n] starts with enc[n]
    node_idx, msg_src, write_pos, nvalid = [], [], [], []
    limit = num_nodes * 10
    t = 0
    while queue and t < limit:
        node, mslot = queue.pop(0)
        c = counts[node]
        node_idx.append(node)
        msg_src.append(mslot)
        write_pos.append(c % MAX_HIST)          # ring position inside node's history slab
        nvalid.append(min(MAX_HIST, c))         # how many ring rows are live
        new_slot = num_nodes + t
        # python set of small ints iterates ascending -> matches `for nb in neighbors[node]`
        for nb in sorted(nbs[node]):
            queue.append((nb, new_slot))
        counts[node] += 1
        t += 1
    return (np.asarray(node_idx, np.int32),
            np.asarray(msg_src, np.int32),
            np.asarray(write_pos, np.int32),
            np.asarray(nvalid, np.int32))


# --------------------------------------------------------------------------
# Parameters (deterministic synthetic init; shapes follow the torch __init__)
# --------------------------------------------------------------------------
def init_params(key, in_features, hidden, message_size, out_features, num_predictions):
    H, M = hidden, message_size
    ks = jax.random.split(key, 12)
    s = 0.1
    WeT = jax.random.normal(ks[0], (in_features, H), jnp.float32) * s   # encoder.weight.T
    be  = jax.random.normal(ks[1], (1, H), jnp.float32) * s
    WqT = jax.random.normal(ks[2], (M, H), jnp.float32) * s             # queries[0].weight.T
    bq  = jax.random.normal(ks[3], (1, H), jnp.float32) * s
    WkT = jax.random.normal(ks[4], (H, H), jnp.float32) * s             # keys[0].weight.T
    bk  = jax.random.normal(ks[5], (1, H), jnp.float32) * s
    WrT = jax.random.normal(ks[6], (4 * H, H), jnp.float32) * s         # multihead_readout.weight.T
    br  = jax.random.normal(ks[7], (1, H), jnp.float32) * s
    WmT = jax.random.normal(ks[8], (H + M, M), jnp.float32) * s         # new_message.weight.T
    bm  = jax.random.normal(ks[9], (1, M), jnp.float32) * s
    WdT = jax.random.normal(ks[10], (num_predictions, H, out_features), jnp.float32) * s
    bd  = jax.random.normal(ks[11], (num_predictions, 1, out_features), jnp.float32) * s
    return (WeT, be, WqT, bq, WkT, bk, WrT, br, WmT, bm, WdT, bd)


# --------------------------------------------------------------------------
# Pallas kernel wrapper
# --------------------------------------------------------------------------
def gwac_attention_forward(x, first_message, params, edge_index, starts, *,
                           hidden, message_size, out_features,
                           num_predictions, graph_class):
    num_nodes = x.shape[0]
    H, M, P = hidden, message_size, num_predictions
    R = 1 if graph_class else num_nodes

    node_idx, msg_src, write_pos, nvalid = build_schedule(edge_index, starts, num_nodes)
    T = int(node_idx.shape[0])
    assert T > 0, "no start nodes -> empty queue"

    (WeT, be, WqT, bq, WkT, bk, WrT, br, WmT, bm, WdT, bd) = params

    # ---- host-side algebraic folds (review items 5/6/11) ------------------
    # torch uses queries[0]/keys[0] for all 4 heads -> 4 identical head values,
    # so concat([v]*4) @ WrT == v @ (sum of the four HxH blocks of WrT).
    Wr_eff = WrT[0:H] + WrT[H:2 * H] + WrT[2 * H:3 * H] + WrT[3 * H:4 * H]       # (H, H)
    Wm_h, Wm_m = WmT[:H], WmT[H:]                                                # (H,M), (M,M)
    Wd_stack = jnp.concatenate([WdT[p] for p in range(P)], axis=1)               # (H, P*out)
    bd_stack = jnp.concatenate([bd[p] for p in range(P)], axis=1)                # (1, P*out)
    inv_sqrt_h = np.float32(1.0 / math.sqrt(H))

    def kernel(node_r, msrc_r, wpos_r, nval_r,                         # SMEM scalar prefetch
               x_r, fm_r, we_r, be_r, wq_r, bq_r, wk_r, bk_r,
               wr_r, br_r, wmh_r, wmm_r, bm_r, wd_r, bd_r,             # VMEM inputs
               out_r,                                                  # VMEM output
               hist_r, msg_r, latest_r):                               # VMEM scratch

        # ---------------- init (runs once) ---------------------------------
        enc = jnp.dot(x_r[...], we_r[...],
                      preferred_element_type=jnp.float32) + be_r[...]  # (N, H)
        latest_r[...] = enc                                            # one dense store
        msg_r[pl.ds(0, num_nodes), :] = fm_r[...]                      # one dense store
        # seed every ring row with the encoded node: masked rows then contribute
        # exactly 0 (finite data, probs==0). One dense (10,H) store per node,
        # init-only.
        for n in range(num_nodes):
            hist_r[n] = jnp.broadcast_to(enc[n:n + 1, :], (MAX_HIST, H))

        # hoist iotas out of the hot loop (no CSE of broadcast_in_dim)
        row10 = lax.broadcasted_iota(jnp.int32, (MAX_HIST, 1), 0)
        rowH = lax.broadcasted_iota(jnp.int32, (MAX_HIST, H), 0)

        # ---------------- message loop --------------------------------------
        def body(t, carry):
            nd = node_r[t]            # target node
            ms = msrc_r[t]            # source message slot
            wp = wpos_r[t]            # ring write position
            nv = nval_r[t]            # number of live history rows

            message = msg_r[pl.ds(ms, 1), :]                           # (1, M)
            feats = hist_r[nd]                                         # (10, H) contiguous load

            query = jnp.dot(message, wq_r[...],
                            preferred_element_type=jnp.float32) + bq_r[...]     # (1, H)
            keys = jnp.dot(feats, wk_r[...],
                           preferred_element_type=jnp.float32) + bk_r[...]      # (10, H)
            logits = jnp.sum(keys * query, axis=-1, keepdims=True) * inv_sqrt_h  # (10, 1)
            logits = jnp.where(row10 < nv, logits, jnp.float32(-1e30))
            mx = jnp.max(logits, axis=0, keepdims=True)
            pexp = jnp.exp(logits - mx)
            probs = pexp * pl.reciprocal(jnp.sum(pexp, axis=0, keepdims=True),
                                         approx=True)                  # softmax over dim 0 (EUP rcp)
            values = jnp.sum(probs * feats, axis=0, keepdims=True)     # (1, H)

            newstate = jnp.dot(values, wr_r[...],
                               preferred_element_type=jnp.float32) + br_r[...]  # (1, H)
            newmsg = (jnp.dot(newstate, wmh_r[...], preferred_element_type=jnp.float32)
                      + jnp.dot(message, wmm_r[...], preferred_element_type=jnp.float32)
                      + bm_r[...])                                               # (1, M)

            # write back: one dense (10,H) store (ring row wp replaced), one (1,H),
            # one (1,M)
            hist_r[nd] = jnp.where(rowH == wp, newstate, feats)
            latest_r[pl.ds(nd, 1), :] = newstate
            msg_r[pl.ds(num_nodes + t, 1), :] = newmsg
            return carry

        lax.fori_loop(0, T, body, 0)

        # ---------------- finalize: readout + decoders + log_softmax --------
        ff = latest_r[...]                                             # (N, H) dense load
        if graph_class:
            ff = jnp.sum(ff, axis=0, keepdims=True)                    # (1, H)
        lg_all = jnp.dot(ff, wd_r[...],
                         preferred_element_type=jnp.float32) + bd_r[...]   # (R, P*out)
        for p_ in range(P):
            lg = lg_all[:, p_ * out_features:(p_ + 1) * out_features]
            mxl = jnp.max(lg, axis=-1, keepdims=True)
            lse = mxl + jnp.log(jnp.sum(jnp.exp(lg - mxl), axis=-1, keepdims=True))
            out_r[pl.ds(p_, 1)] = (lg - lse).reshape(1, R, out_features)

    operands = (x, first_message, WeT, be, WqT, bq, WkT, bk,
                Wr_eff, br, Wm_h, Wm_m, bm, Wd_stack, bd_stack)

    def full_spec(a):
        zeros = (0,) * a.ndim
        return pl.BlockSpec(a.shape, lambda i, *_: zeros)

    grid_spec = pltpu.PrefetchScalarGridSpec(
        num_scalar_prefetch=4,
        grid=(1,),                                  # single step; loop is in-kernel
        in_specs=[full_spec(a) for a in operands],
        out_specs=pl.BlockSpec((P, R, out_features), lambda i, *_: (0, 0, 0)),
        scratch_shapes=[
            pltpu.VMEM((num_nodes, MAX_HIST, H), jnp.float32),   # prediction ring per node
            pltpu.VMEM((num_nodes + T, M), jnp.float32),         # message buffer (lane dense)
            pltpu.VMEM((num_nodes, H), jnp.float32),             # latest prediction per node
        ],
    )

    fn = pl.pallas_call(
        kernel,
        grid_spec=grid_spec,
        out_shape=jax.ShapeDtypeStruct((P, R, out_features), jnp.float32),
        compiler_params=pltpu.CompilerParams(dimension_semantics=("arbitrary",)),
    )
    return fn(jnp.asarray(node_idx), jnp.asarray(msg_src),
              jnp.asarray(write_pos), jnp.asarray(nvalid), *operands)


# --------------------------------------------------------------------------
# Pure-JAX reference (mirrors the torch forward, for verification)
# --------------------------------------------------------------------------
def reference_forward(x, first_message, params, edge_index, starts, *,
                      hidden, message_size, out_features,
                      num_predictions, graph_class):
    (WeT, be, WqT, bq, WkT, bk, WrT, br, WmT, bm, WdT, bd) = params
    num_nodes = x.shape[0]
    mm = lambda a, b: jnp.dot(a, b, precision=lax.Precision.HIGHEST)
    src, dst = edge_index
    nbs = {n: set() for n in range(num_nodes)}
    for s, d in zip(src, dst):
        nbs[int(s)].add(int(d))
        nbs[int(d)].add(int(s))
    encoded = mm(x, WeT) + be
    predictions = {i: [encoded[i:i + 1, :]] for i in range(num_nodes)}
    queue = [(i, first_message[i:i + 1, :]) for i in range(num_nodes) if starts[i]]
    messages = 0
    while queue and messages < num_nodes * 10:
        messages += 1
        node, message = queue.pop(0)
        feats = jnp.concatenate(
            [predictions[node][-i - 1] for i in range(min(10, len(predictions[node])))], axis=0)
        heads = []
        for _ in range(4):
            query = mm(message, WqT) + bq
            keys = mm(feats, WkT) + bk
            logits = jax.nn.softmax(mm(keys, query.T) / math.sqrt(hidden), axis=0)
            heads.append(jnp.sum(logits * feats, axis=0, keepdims=True))
        newstate = mm(jnp.concatenate(heads, axis=1), WrT) + br
        newmsg = mm(jnp.concatenate([newstate, message], axis=1), WmT) + bm
        for nb in sorted(nbs[node]):
            queue.append((nb, newmsg))
        predictions[node].append(newstate)
    ff = jnp.concatenate([predictions[i][-1] for i in range(num_nodes)], axis=0)
    if graph_class:
        ff = jnp.sum(ff, axis=0, keepdims=True)
    outs = [jax.nn.log_softmax(mm(ff, WdT[p]) + bd[p], axis=-1) for p in range(num_predictions)]
    return jnp.stack(outs, axis=0)


# --------------------------------------------------------------------------
if __name__ == "__main__":
    num_nodes, in_features = 6, 6
    hidden, message_size = 32, 16
    out_features, num_predictions = 4, 2
    graph_class = True

    key = jax.random.PRNGKey(0)
    kx, kf, kp = jax.random.split(key, 3)
    x = jax.random.normal(kx, (num_nodes, in_features), jnp.float32)
    first_message = jax.random.normal(kf, (num_nodes, message_size), jnp.float32)
    params = init_params(kp, in_features, hidden, message_size, out_features, num_predictions)

    # small connected graph (ring + chord); two start nodes
    edge_index = ([0, 1, 2, 3, 4, 5, 0], [1, 2, 3, 4, 5, 0, 3])
    starts = [True, False, True, False, False, False]

    out = gwac_attention_forward(
        x, first_message, params, edge_index, starts,
        hidden=hidden, message_size=message_size, out_features=out_features,
        num_predictions=num_predictions, graph_class=graph_class)
    out = jax.block_until_ready(out)

    ref = reference_forward(
        x, first_message, params, edge_index, starts,
        hidden=hidden, message_size=message_size, out_features=out_features,
        num_predictions=num_predictions, graph_class=graph_class)

    assert out.shape == (num_predictions, 1, out_features)
    assert np.all(np.isfinite(np.asarray(out)))
    assert np.allclose(np.asarray(out), np.asarray(ref), atol=2e-2, rtol=2e-2)
    print("KERNEL_OK")
</pallas_src>

<mosaic_0001>
module attributes {stable_mosaic.version = 11 : i64} {
  func.func @kernel(%arg0: i32, %arg1: memref<60xi32, #tpu.memory_space<smem>>, %arg2: memref<60xi32, #tpu.memory_space<smem>>, %arg3: memref<60xi32, #tpu.memory_space<smem>>, %arg4: memref<60xi32, #tpu.memory_space<smem>>, %arg5: memref<6x6xf32, #tpu.memory_space<vmem>>, %arg6: memref<6x16xf32, #tpu.memory_space<vmem>>, %arg7: memref<6x32xf32, #tpu.memory_space<vmem>>, %arg8: memref<1x32xf32, #tpu.memory_space<vmem>>, %arg9: memref<16x32xf32, #tpu.memory_space<vmem>>, %arg10: memref<1x32xf32, #tpu.memory_space<vmem>>, %arg11: memref<32x32xf32, #tpu.memory_space<vmem>>, %arg12: memref<1x32xf32, #tpu.memory_space<vmem>>, %arg13: memref<32x32xf32, #tpu.memory_space<vmem>>, %arg14: memref<1x32xf32, #tpu.memory_space<vmem>>, %arg15: memref<32x16xf32, #tpu.memory_space<vmem>>, %arg16: memref<16x16xf32, #tpu.memory_space<vmem>>, %arg17: memref<1x16xf32, #tpu.memory_space<vmem>>, %arg18: memref<32x8xf32, #tpu.memory_space<vmem>>, %arg19: memref<1x8xf32, #tpu.memory_space<vmem>>, %arg20: memref<2x1x4xf32, #tpu.memory_space<vmem>>, %arg21: memref<6x10x32xf32, #tpu.memory_space<vmem>>, %arg22: memref<66x16xf32, #tpu.memory_space<vmem>>, %arg23: memref<6x32xf32, #tpu.memory_space<vmem>>) attributes {dimension_semantics = [#tpu.dimension_semantics<arbitrary>], iteration_bounds = array<i64: 1>, scalar_prefetch = 4 : i64, scratch_operands = 3 : i64, tpu.core_type = #tpu.core_type<tc>, window_params = [{pipeline_mode = #tpu.pipeline_mode<synchronous>, transform_indices = @transform_0, window_bounds = array<i64: 6, 6>}, {pipeline_mode = #tpu.pipeline_mode<synchronous>, transform_indices = @transform_1, window_bounds = array<i64: 6, 16>}, {pipeline_mode = #tpu.pipeline_mode<synchronous>, transform_indices = @transform_2, window_bounds = array<i64: 6, 32>}, {pipeline_mode = #tpu.pipeline_mode<synchronous>, transform_indices = @transform_3, window_bounds = array<i64: 1, 32>}, {pipeline_mode = #tpu.pipeline_mode<synchronous>, transform_indices = @transform_4, window_bounds = array<i64: 16, 32>}, {pipeline_mode = #tpu.pipeline_mode<synchronous>, transform_indices = @transform_5, window_bounds = array<i64: 1, 32>}, {pipeline_mode = #tpu.pipeline_mode<synchronous>, transform_indices = @transform_6, window_bounds = array<i64: 32, 32>}, {pipeline_mode = #tpu.pipeline_mode<synchronous>, transform_indices = @transform_7, window_bounds = array<i64: 1, 32>}, {pipeline_mode = #tpu.pipeline_mode<synchronous>, transform_indices = @transform_8, window_bounds = array<i64: 32, 32>}, {pipeline_mode = #tpu.pipeline_mode<synchronous>, transform_indices = @transform_9, window_bounds = array<i64: 1, 32>}, {pipeline_mode = #tpu.pipeline_mode<synchronous>, transform_indices = @transform_10, window_bounds = array<i64: 32, 16>}, {pipeline_mode = #tpu.pipeline_mode<synchronous>, transform_indices = @transform_11, window_bounds = array<i64: 16, 16>}, {pipeline_mode = #tpu.pipeline_mode<synchronous>, transform_indices = @transform_12, window_bounds = array<i64: 1, 16>}, {pipeline_mode = #tpu.pipeline_mode<synchronous>, transform_indices = @transform_13, window_bounds = array<i64: 32, 8>}, {pipeline_mode = #tpu.pipeline_mode<synchronous>, transform_indices = @transform_14, window_bounds = array<i64: 1, 8>}, {pipeline_mode = #tpu.pipeline_mode<synchronous>, transform_indices = @transform_15, window_bounds = array<i64: 2, 1, 4>}]} {
    %c0 = arith.constant 0 : index
    %c0_0 = arith.constant 0 : index
    %0 = vector.load %arg5[%c0, %c0_0] : memref<6x6xf32, #tpu.memory_space<vmem>>, vector<6x6xf32>
    %c0_1 = arith.constant 0 : index
    %c0_2 = arith.constant 0 : index
    %1 = vector.load %arg7[%c0_1, %c0_2] : memref<6x32xf32, #tpu.memory_space<vmem>>, vector<6x32xf32>
    %cst = arith.constant dense<0.000000e+00> : vector<6x32xf32>
    %2 = tpu.matmul %0, %1, %cst {dimension_numbers = #tpu.dot_dimension_numbers<[1], [0], [0], [1], [0, 0, 1, 1], [], []>} : vector<6x6xf32>, vector<6x32xf32>, vector<6x32xf32> -> vector<6x32xf32>
    %c0_3 = arith.constant 0 : index
    %c0_4 = arith.constant 0 : index
    %3 = vector.load %arg8[%c0_3, %c0_4] : memref<1x32xf32, #tpu.memory_space<vmem>>, vector<1x32xf32>
    %4 = vector.broadcast %3 : vector<1x32xf32> to vector<6x32xf32>
    %5 = arith.addf %2, %4 : vector<6x32xf32>
    %c0_5 = arith.constant 0 : index
    %c0_6 = arith.constant 0 : index
    %6 = vector.load %arg23[%c0_5, %c0_6] : memref<6x32xf32, #tpu.memory_space<vmem>>, vector<6x32xf32>
    tpu.vector_store %arg23[%c0_5, %c0_6], %5 {strides = array<i32>} : memref<6x32xf32, #tpu.memory_space<vmem>>, vector<6x32xf32>,
    %c0_7 = arith.constant 0 : index
    %c0_8 = arith.constant 0 : index
    %7 = vector.load %arg6[%c0_7, %c0_8] : memref<6x16xf32, #tpu.memory_space<vmem>>, vector<6x16xf32>
    %c0_9 = arith.constant 0 : index
    %c0_10 = arith.constant 0 : index
    %8 = vector.load %arg22[%c0_9, %c0_10] : memref<66x16xf32, #tpu.memory_space<vmem>>, vector<6x16xf32>
    tpu.vector_store %arg22[%c0_9, %c0_10], %7 {strides = array<i32>} : memref<66x16xf32, #tpu.memory_space<vmem>>, vector<6x16xf32>,
    %9 = vector.extract_strided_slice %5 {offsets = [0, 0], sizes = [1, 32], strides = [1, 1]} : vector<6x32xf32> to vector<1x32xf32>
    %10 = vector.shape_cast %9 : vector<1x32xf32> to vector<1x32xf32>
    %11 = vector.broadcast %10 : vector<1x32xf32> to vector<10x32xf32>
    %c0_11 = arith.constant 0 : index
    %c0_12 = arith.constant 0 : index
    %c0_13 = arith.constant 0 : index
    %12 = vector.load %arg21[%c0_11, %c0_12, %c0_13] : memref<6x10x32xf32, #tpu.memory_space<vmem>>, vector<1x10x32xf32>
    %13 = vector.shape_cast %12 : vector<1x10x32xf32> to vector<10x32xf32>
    %14 = vector.shape_cast %11 : vector<10x32xf32> to vector<1x10x32xf32>
    tpu.vector_store %arg21[%c0_11, %c0_12, %c0_13], %14 {strides = array<i32>} : memref<6x10x32xf32, #tpu.memory_space<vmem>>, vector<1x10x32xf32>,
    %15 = vector.extract_strided_slice %5 {offsets = [1, 0], sizes = [1, 32], strides = [1, 1]} : vector<6x32xf32> to vector<1x32xf32>
    %16 = vector.shape_cast %15 : vector<1x32xf32> to vector<1x32xf32>
    %17 = vector.broadcast %16 : vector<1x32xf32> to vector<10x32xf32>
    %c1 = arith.constant 1 : index
    %c0_14 = arith.constant 0 : index
    %c0_15 = arith.constant 0 : index
    %18 = vector.load %arg21[%c1, %c0_14, %c0_15] : memref<6x10x32xf32, #tpu.memory_space<vmem>>, vector<1x10x32xf32>
    %19 = vector.shape_cast %18 : vector<1x10x32xf32> to vector<10x32xf32>
    %20 = vector.shape_cast %17 : vector<10x32xf32> to vector<1x10x32xf32>
    tpu.vector_store %arg21[%c1, %c0_14, %c0_15], %20 {strides = array<i32>} : memref<6x10x32xf32, #tpu.memory_space<vmem>>, vector<1x10x32xf32>,
    %21 = vector.extract_strided_slice %5 {offsets = [2, 0], sizes = [1, 32], strides = [1, 1]} : vector<6x32xf32> to vector<1x32xf32>
    %22 = vector.shape_cast %21 : vector<1x32xf32> to vector<1x32xf32>
    %23 = vector.broadcast %22 : vector<1x32xf32> to vector<10x32xf32>
    %c2 = arith.constant 2 : index
    %c0_16 = arith.constant 0 : index
    %c0_17 = arith.constant 0 : index
    %24 = vector.load %arg21[%c2, %c0_16, %c0_17] : memref<6x10x32xf32, #tpu.memory_space<vmem>>, vector<1x10x32xf32>
    %25 = vector.shape_cast %24 : vector<1x10x32xf32> to vector<10x32xf32>
    %26 = vector.shape_cast %23 : vector<10x32xf32> to vector<1x10x32xf32>
    tpu.vector_store %arg21[%c2, %c0_16, %c0_17], %26 {strides = array<i32>} : memref<6x10x32xf32, #tpu.memory_space<vmem>>, vector<1x10x32xf32>,
    %27 = vector.extract_strided_slice %5 {offsets = [3, 0], sizes = [1, 32], strides = [1, 1]} : vector<6x32xf32> to vector<1x32xf32>
    %28 = vector.shape_cast %27 : vector<1x32xf32> to vector<1x32xf32>
    %29 = vector.broadcast %28 : vector<1x32xf32> to vector<10x32xf32>
    %c3 = arith.constant 3 : index
    %c0_18 = arith.constant 0 : index
    %c0_19 = arith.constant 0 : index
    %30 = vector.load %arg21[%c3, %c0_18, %c0_19] : memref<6x10x32xf32, #tpu.memory_space<vmem>>, vector<1x10x32xf32>
    %31 = vector.shape_cast %30 : vector<1x10x32xf32> to vector<10x32xf32>
    %32 = vector.shape_cast %29 : vector<10x32xf32> to vector<1x10x32xf32>
    tpu.vector_store %arg21[%c3, %c0_18, %c0_19], %32 {strides = array<i32>} : memref<6x10x32xf32, #tpu.memory_space<vmem>>, vector<1x10x32xf32>,
    %33 = vector.extract_strided_slice %5 {offsets = [4, 0], sizes = [1, 32], strides = [1, 1]} : vector<6x32xf32> to vector<1x32xf32>
    %34 = vector.shape_cast %33 : vector<1x32xf32> to vector<1x32xf32>
    %35 = vector.broadcast %34 : vector<1x32xf32> to vector<10x32xf32>
    %c4 = arith.constant 4 : index
    %c0_20 = arith.constant 0 : index
    %c0_21 = arith.constant 0 : index
    %36 = vector.load %arg21[%c4, %c0_20, %c0_21] : memref<6x10x32xf32, #tpu.memory_space<vmem>>, vector<1x10x32xf32>
    %37 = vector.shape_cast %36 : vector<1x10x32xf32> to vector<10x32xf32>
    %38 = vector.shape_cast %35 : vector<10x32xf32> to vector<1x10x32xf32>
    tpu.vector_store %arg21[%c4, %c0_20, %c0_21], %38 {strides = array<i32>} : memref<6x10x32xf32, #tpu.memory_space<vmem>>, vector<1x10x32xf32>,
    %39 = vector.extract_strided_slice %5 {offsets = [5, 0], sizes = [1, 32], strides = [1, 1]} : vector<6x32xf32> to vector<1x32xf32>
    %40 = vector.shape_cast %39 : vector<1x32xf32> to vector<1x32xf32>
    %41 = vector.broadcast %40 : vector<1x32xf32> to vector<10x32xf32>
    %c5 = arith.constant 5 : index
    %c0_22 = arith.constant 0 : index
    %c0_23 = arith.constant 0 : index
    %42 = vector.load %arg21[%c5, %c0_22, %c0_23] : memref<6x10x32xf32, #tpu.memory_space<vmem>>, vector<1x10x32xf32>
    %43 = vector.shape_cast %42 : vector<1x10x32xf32> to vector<10x32xf32>
    %44 = vector.shape_cast %41 : vector<10x32xf32> to vector<1x10x32xf32>
    tpu.vector_store %arg21[%c5, %c0_22, %c0_23], %44 {strides = array<i32>} : memref<6x10x32xf32, #tpu.memory_space<vmem>>, vector<1x10x32xf32>,
    %45 = tpu.iota {dimensions = array<i32: 0>} : vector<10x1xi32>
    %46 = tpu.iota {dimensions = array<i32: 0>} : vector<10x32xi32>
    %c0_i32 = arith.constant 0 : i32
    %c60_i32 = arith.constant 60 : i32
    %47 = arith.addi %c0_i32, %c60_i32 : i32
    %c1_i32 = arith.constant 1 : i32
    scf.for %arg24 = %c0_i32 to %47 step %c1_i32  : i32 {
      %83 = arith.index_cast %arg24 : i32 to index
      %84 = memref.load %arg1[%83] : memref<60xi32, #tpu.memory_space<smem>>
      %85 = arith.index_cast %arg24 : i32 to index
      %86 = memref.load %arg2[%85] : memref<60xi32, #tpu.memory_space<smem>>
      %87 = arith.index_cast %arg24 : i32 to index
      %88 = memref.load %arg3[%87] : memref<60xi32, #tpu.memory_space<smem>>
      %89 = arith.index_cast %arg24 : i32 to index
      %90 = memref.load %arg4[%89] : memref<60xi32, #tpu.memory_space<smem>>
      %91 = arith.index_cast %86 : i32 to index
      %c0_43 = arith.constant 0 : index
      %92 = vector.load %arg22[%91, %c0_43] : memref<66x16xf32, #tpu.memory_space<vmem>>, vector<1x16xf32>
      %93 = arith.index_cast %84 : i32 to index
      %c0_44 = arith.constant 0 : index
      %c0_45 = arith.constant 0 : index
      %94 = vector.load %arg21[%93, %c0_44, %c0_45] : memref<6x10x32xf32, #tpu.memory_space<vmem>>, vector<1x10x32xf32>
      %95 = vector.shape_cast %94 : vector<1x10x32xf32> to vector<10x32xf32>
      %c0_46 = arith.constant 0 : index
      %c0_47 = arith.constant 0 : index
      %96 = vector.load %arg9[%c0_46, %c0_47] : memref<16x32xf32, #tpu.memory_space<vmem>>, vector<16x32xf32>
      %cst_48 = arith.constant dense<0.000000e+00> : vector<1x32xf32>
      %97 = tpu.matmul %92, %96, %cst_48 {dimension_numbers = #tpu.dot_dimension_numbers<[1], [0], [0], [1], [0, 0, 1, 1], [], []>} : vector<1x16xf32>, vector<16x32xf32>, vector<1x32xf32> -> vector<1x32xf32>
      %c0_49 = arith.constant 0 : index
      %c0_50 = arith.constant 0 : index
      %98 = vector.load %arg10[%c0_49, %c0_50] : memref<1x32xf32, #tpu.memory_space<vmem>>, vector<1x32xf32>
      %99 = arith.addf %97, %98 : vector<1x32xf32>
      %c0_51 = arith.constant 0 : index
      %c0_52 = arith.constant 0 : index
      %100 = vector.load %arg11[%c0_51, %c0_52] : memref<32x32xf32, #tpu.memory_space<vmem>>, vector<32x32xf32>
      %cst_53 = arith.constant dense<0.000000e+00> : vector<10x32xf32>
      %101 = tpu.matmul %95, %100, %cst_53 {dimension_numbers = #tpu.dot_dimension_numbers<[1], [0], [0], [1], [0, 0, 1, 1], [], []>} : vector<10x32xf32>, vector<32x32xf32>, vector<10x32xf32> -> vector<10x32xf32>
      %c0_54 = arith.constant 0 : index
      %c0_55 = arith.constant 0 : index
      %102 = vector.load %arg12[%c0_54, %c0_55] : memref<1x32xf32, #tpu.memory_space<vmem>>, vector<1x32xf32>
      %103 = vector.broadcast %102 : vector<1x32xf32> to vector<10x32xf32>
      %104 = arith.addf %101, %103 : vector<10x32xf32>
      %105 = vector.broadcast %99 : vector<1x32xf32> to vector<10x32xf32>
      %106 = arith.mulf %104, %105 : vector<10x32xf32>
      %cst_56 = arith.constant dense<0.000000e+00> : vector<10xf32>
      %107 = vector.multi_reduction <add>, %106, %cst_56 [1] : vector<10x32xf32> to vector<10xf32>
      %108 = vector.shape_cast %107 : vector<10xf32> to vector<10x1xf32>
      %cst_57 = arith.constant 0.176776692 : f32
      %109 = vector.broadcast %cst_57 : f32 to vector<10x1xf32>
      %110 = arith.mulf %108, %109 : vector<10x1xf32>
      %111 = vector.broadcast %90 : i32 to vector<10x1xi32>
      %112 = arith.cmpi slt, %45, %111 : vector<10x1xi32>
      %cst_58 = arith.constant -1.000000e+30 : f32
      %113 = vector.broadcast %cst_58 : f32 to vector<10x1xf32>
      %114 = arith.select %112, %110, %113 : vector<10x1xi1>, vector<10x1xf32>
      %cst_59 = arith.constant dense<0xFF800000> : vector<1xf32>
      %115 = vector.multi_reduction <maximumf>, %114, %cst_59 [0] : vector<10x1xf32> to vector<1xf32>
      %116 = vector.shape_cast %115 : vector<1xf32> to vector<1x1xf32>
      %117 = vector.broadcast %116 : vector<1x1xf32> to vector<10x1xf32>
      %118 = arith.subf %114, %117 : vector<10x1xf32>
      %119 = math.exp %118 : vector<10x1xf32>
      %cst_60 = arith.constant dense<0.000000e+00> : vector<1xf32>
      %120 = vector.multi_reduction <add>, %119, %cst_60 [0] : vector<10x1xf32> to vector<1xf32>
      %121 = vector.shape_cast %120 : vector<1xf32> to vector<1x1xf32>
      %122 = tpu.reciprocal %121 {approx = true} : vector<1x1xf32> -> vector<1x1xf32>
      %123 = vector.broadcast %122 : vector<1x1xf32> to vector<10x1xf32>
      %124 = arith.mulf %119, %123 : vector<10x1xf32>
      %125 = vector.broadcast %124 : vector<10x1xf32> to vector<10x32xf32>
      %126 = arith.mulf %125, %95 : vector<10x32xf32>
      %cst_61 = arith.constant dense<0.000000e+00> : vector<32xf32>
      %127 = vector.multi_reduction <add>, %126, %cst_61 [0] : vector<10x32xf32> to vector<32xf32>
      %128 = vector.shape_cast %127 : vector<32xf32> to vector<1x32xf32>
      %c0_62 = arith.constant 0 : index
      %c0_63 = arith.constant 0 : index
      %129 = vector.load %arg13[%c0_62, %c0_63] : memref<32x32xf32, #tpu.memory_space<vmem>>, vector<32x32xf32>
      %cst_64 = arith.constant dense<0.000000e+00> : vector<1x32xf32>
      %130 = tpu.matmul %128, %129, %cst_64 {dimension_numbers = #tpu.dot_dimension_numbers<[1], [0], [0], [1], [0, 0, 1, 1], [], []>} : vector<1x32xf32>, vector<32x32xf32>, vector<1x32xf32> -> vector<1x32xf32>
      %c0_65 = arith.constant 0 : index
      %c0_66 = arith.constant 0 : index
      %131 = vector.load %arg14[%c0_65, %c0_66] : memref<1x32xf32, #tpu.memory_space<vmem>>, vector<1x32xf32>
      %132 = arith.addf %130, %131 : vector<1x32xf32>
      %c0_67 = arith.constant 0 : index
      %c0_68 = arith.constant 0 : index
      %133 = vector.load %arg15[%c0_67, %c0_68] : memref<32x16xf32, #tpu.memory_space<vmem>>, vector<32x16xf32>
      %cst_69 = arith.constant dense<0.000000e+00> : vector<1x16xf32>
      %134 = tpu.matmul %132, %133, %cst_69 {dimension_numbers = #tpu.dot_dimension_numbers<[1], [0], [0], [1], [0, 0, 1, 1], [], []>} : vector<1x32xf32>, vector<32x16xf32>, vector<1x16xf32> -> vector<1x16xf32>
      %c0_70 = arith.constant 0 : index
      %c0_71 = arith.constant 0 : index
      %135 = vector.load %arg16[%c0_70, %c0_71] : memref<16x16xf32, #tpu.memory_space<vmem>>, vector<16x16xf32>
      %cst_72 = arith.constant dense<0.000000e+00> : vector<1x16xf32>
      %136 = tpu.matmul %92, %135, %cst_72 {dimension_numbers = #tpu.dot_dimension_numbers<[1], [0], [0], [1], [0, 0, 1, 1], [], []>} : vector<1x16xf32>, vector<16x16xf32>, vector<1x16xf32> -> vector<1x16xf32>
      %137 = arith.addf %134, %136 : vector<1x16xf32>
      %c0_73 = arith.constant 0 : index
      %c0_74 = arith.constant 0 : index
      %138 = vector.load %arg17[%c0_73, %c0_74] : memref<1x16xf32, #tpu.memory_space<vmem>>, vector<1x16xf32>
      %139 = arith.addf %137, %138 : vector<1x16xf32>
      %140 = vector.broadcast %88 : i32 to vector<10x32xi32>
      %141 = arith.cmpi eq, %46, %140 : vector<10x32xi32>
      %142 = vector.shape_cast %132 : vector<1x32xf32> to vector<1x32xf32>
      %143 = vector.broadcast %142 : vector<1x32xf32> to vector<10x32xf32>
      %144 = arith.select %141, %143, %95 : vector<10x32xi1>, vector<10x32xf32>
      %145 = arith.index_cast %84 : i32 to index
      %c0_75 = arith.constant 0 : index
      %c0_76 = arith.constant 0 : index
      %146 = vector.load %arg21[%145, %c0_75, %c0_76] : memref<6x10x32xf32, #tpu.memory_space<vmem>>, vector<1x10x32xf32>
      %147 = vector.shape_cast %146 : vector<1x10x32xf32> to vector<10x32xf32>
      %148 = vector.shape_cast %144 : vector<10x32xf32> to vector<1x10x32xf32>
      tpu.vector_store %arg21[%145, %c0_75, %c0_76], %148 {strides = array<i32>} : memref<6x10x32xf32, #tpu.memory_space<vmem>>, vector<1x10x32xf32>,
      %149 = arith.index_cast %84 : i32 to index
      %c0_77 = arith.constant 0 : index
      %150 = vector.load %arg23[%149, %c0_77] : memref<6x32xf32, #tpu.memory_space<vmem>>, vector<1x32xf32>
      tpu.vector_store %arg23[%149, %c0_77], %132 {strides = array<i32>} : memref<6x32xf32, #tpu.memory_space<vmem>>, vector<1x32xf32>,
      %c6_i32 = arith.constant 6 : i32
      %151 = arith.addi %c6_i32, %arg24 : i32
      %152 = arith.index_cast %151 : i32 to index
      %c0_78 = arith.constant 0 : index
      %153 = vector.load %arg22[%152, %c0_78] : memref<66x16xf32, #tpu.memory_space<vmem>>, vector<1x16xf32>
      tpu.vector_store %arg22[%152, %c0_78], %139 {strides = array<i32>} : memref<66x16xf32, #tpu.memory_space<vmem>>, vector<1x16xf32>,
    }
    %c60_i32_24 = arith.constant 60 : i32
    %c0_25 = arith.constant 0 : index
    %c0_26 = arith.constant 0 : index
    %48 = vector.load %arg23[%c0_25, %c0_26] : memref<6x32xf32, #tpu.memory_space<vmem>>, vector<6x32xf32>
    %cst_27 = arith.constant dense<0.000000e+00> : vector<32xf32>
    %49 = vector.multi_reduction <add>, %48, %cst_27 [0] : vector<6x32xf32> to vector<32xf32>
    %50 = vector.shape_cast %49 : vector<32xf32> to vector<1x32xf32>
    %c0_28 = arith.constant 0 : index
    %c0_29 = arith.constant 0 : index
    %51 = vector.load %arg18[%c0_28, %c0_29] : memref<32x8xf32, #tpu.memory_space<vmem>>, vector<32x8xf32>
    %cst_30 = arith.constant dense<0.000000e+00> : vector<1x8xf32>
    %52 = tpu.matmul %50, %51, %cst_30 {dimension_numbers = #tpu.dot_dimension_numbers<[1], [0], [0], [1], [0, 0, 1, 1], [], []>} : vector<1x32xf32>, vector<32x8xf32>, vector<1x8xf32> -> vector<1x8xf32>
    %c0_31 = arith.constant 0 : index
    %c0_32 = arith.constant 0 : index
    %53 = vector.load %arg19[%c0_31, %c0_32] : memref<1x8xf32, #tpu.memory_space<vmem>>, vector<1x8xf32>
    %54 = arith.addf %52, %53 : vector<1x8xf32>
    %55 = vector.extract_strided_slice %54 {offsets = [0, 0], sizes = [1, 4], strides = [1, 1]} : vector<1x8xf32> to vector<1x4xf32>
    %cst_33 = arith.constant dense<0xFF800000> : vector<1xf32>
    %56 = vector.multi_reduction <maximumf>, %55, %cst_33 [1] : vector<1x4xf32> to vector<1xf32>
    %57 = vector.shape_cast %56 : vector<1xf32> to vector<1x1xf32>
    %58 = vector.broadcast %57 : vector<1x1xf32> to vector<1x4xf32>
    %59 = arith.subf %55, %58 : vector<1x4xf32>
    %60 = math.exp %59 : vector<1x4xf32>
    %cst_34 = arith.constant dense<0.000000e+00> : vector<1xf32>
    %61 = vector.multi_reduction <add>, %60, %cst_34 [1] : vector<1x4xf32> to vector<1xf32>
    %62 = vector.shape_cast %61 : vector<1xf32> to vector<1x1xf32>
    %63 = math.log %62 : vector<1x1xf32>
    %64 = arith.addf %57, %63 : vector<1x1xf32>
    %65 = vector.broadcast %64 : vector<1x1xf32> to vector<1x4xf32>
    %66 = arith.subf %55, %65 : vector<1x4xf32>
    %67 = vector.shape_cast %66 : vector<1x4xf32> to vector<1x1x4xf32>
    %c0_35 = arith.constant 0 : index
    %c0_36 = arith.constant 0 : index
    %c0_37 = arith.constant 0 : index
    %68 = vector.load %arg20[%c0_35, %c0_36, %c0_37] : memref<2x1x4xf32, #tpu.memory_space<vmem>>, vector<1x1x4xf32>
    tpu.vector_store %arg20[%c0_35, %c0_36, %c0_37], %67 {strides = array<i32>} : memref<2x1x4xf32, #tpu.memory_space<vmem>>, vector<1x1x4xf32>,
    %69 = vector.extract_strided_slice %54 {offsets = [0, 4], sizes = [1, 4], strides = [1, 1]} : vector<1x8xf32> to vector<1x4xf32>
    %cst_38 = arith.constant dense<0xFF800000> : vector<1xf32>
    %70 = vector.multi_reduction <maximumf>, %69, %cst_38 [1] : vector<1x4xf32> to vector<1xf32>
    %71 = vector.shape_cast %70 : vector<1xf32> to vector<1x1xf32>
    %72 = vector.broadcast %71 : vector<1x1xf32> to vector<1x4xf32>
    %73 = arith.subf %69, %72 : vector<1x4xf32>
    %74 = math.exp %73 : vector<1x4xf32>
    %cst_39 = arith.constant dense<0.000000e+00> : vector<1xf32>
    %75 = vector.multi_reduction <add>, %74, %cst_39 [1] : vector<1x4xf32> to vector<1xf32>
    %76 = vector.shape_cast %75 : vector<1xf32> to vector<1x1xf32>
    %77 = math.log %76 : vector<1x1xf32>
    %78 = arith.addf %71, %77 : vector<1x1xf32>
    %79 = vector.broadcast %78 : vector<1x1xf32> to vector<1x4xf32>
    %80 = arith.subf %69, %79 : vector<1x4xf32>
    %81 = vector.shape_cast %80 : vector<1x4xf32> to vector<1x1x4xf32>
    %c1_40 = arith.constant 1 : index
    %c0_41 = arith.constant 0 : index
    %c0_42 = arith.constant 0 : index
    %82 = vector.load %arg20[%c1_40, %c0_41, %c0_42] : memref<2x1x4xf32, #tpu.memory_space<vmem>>, vector<1x1x4xf32>
    tpu.vector_store %arg20[%c1_40, %c0_41, %c0_42], %81 {strides = array<i32>} : memref<2x1x4xf32, #tpu.memory_space<vmem>>, vector<1x1x4xf32>,
    return
  }
  func.func @transform_0(%arg0: i32, %arg1: memref<60xi32, #tpu.memory_space<smem>>, %arg2: memref<60xi32, #tpu.memory_space<smem>>, %arg3: memref<60xi32, #tpu.memory_space<smem>>, %arg4: memref<60xi32, #tpu.memory_space<smem>>) -> (i32, i32) {
    %c0_i32 = arith.constant 0 : i32
    %c0_i32_0 = arith.constant 0 : i32
    %c0_i32_1 = arith.constant 0 : i32
    return %c0_i32, %c0_i32_0 : i32, i32
  }
  func.func @transform_1(%arg0: i32, %arg1: memref<60xi32, #tpu.memory_space<smem>>, %arg2: memref<60xi32, #tpu.memory_space<smem>>, %arg3: memref<60xi32, #tpu.memory_space<smem>>, %arg4: memref<60xi32, #tpu.memory_space<smem>>) -> (i32, i32) {
    %c0_i32 = arith.constant 0 : i32
    %c0_i32_0 = arith.constant 0 : i32
    %c0_i32_1 = arith.constant 0 : i32
    return %c0_i32, %c0_i32_0 : i32, i32
  }
  func.func @transform_2(%arg0: i32, %arg1: memref<60xi32, #tpu.memory_space<smem>>, %arg2: memref<60xi32, #tpu.memory_space<smem>>, %arg3: memref<60xi32, #tpu.memory_space<smem>>, %arg4: memref<60xi32, #tpu.memory_space<smem>>) -> (i32, i32) {
    %c0_i32 = arith.constant 0 : i32
    %c0_i32_0 = arith.constant 0 : i32
    %c0_i32_1 = arith.constant 0 : i32
    return %c0_i32, %c0_i32_0 : i32, i32
  }
  func.func @transform_3(%arg0: i32, %arg1: memref<60xi32, #tpu.memory_space<smem>>, %arg2: memref<60xi32, #tpu.memory_space<smem>>, %arg3: memref<60xi32, #tpu.memory_space<smem>>, %arg4: memref<60xi32, #tpu.memory_space<smem>>) -> (i32, i32) {
    %c0_i32 = arith.constant 0 : i32
    %c0_i32_0 = arith.constant 0 : i32
    %c0_i32_1 = arith.constant 0 : i32
    return %c0_i32, %c0_i32_0 : i32, i32
  }
  func.func @transform_4(%arg0: i32, %arg1: memref<60xi32, #tpu.memory_space<smem>>, %arg2: memref<60xi32, #tpu.memory_space<smem>>, %arg3: memref<60xi32, #tpu.memory_space<smem>>, %arg4: memref<60xi32, #tpu.memory_space<smem>>) -> (i32, i32) {
    %c0_i32 = arith.constant 0 : i32
    %c0_i32_0 = arith.constant 0 : i32
    %c0_i32_1 = arith.constant 0 : i32
    return %c0_i32, %c0_i32_0 : i32, i32
  }
  func.func @transform_5(%arg0: i32, %arg1: memref<60xi32, #tpu.memory_space<smem>>, %arg2: memref<60xi32, #tpu.memory_space<smem>>, %arg3: memref<60xi32, #tpu.memory_space<smem>>, %arg4: memref<60xi32, #tpu.memory_space<smem>>) -> (i32, i32) {
    %c0_i32 = arith.constant 0 : i32
    %c0_i32_0 = arith.constant 0 : i32
    %c0_i32_1 = arith.constant 0 : i32
    return %c0_i32, %c0_i32_0 : i32, i32
  }
  func.func @transform_6(%arg0: i32, %arg1: memref<60xi32, #tpu.memory_space<smem>>, %arg2: memref<60xi32, #tpu.memory_space<smem>>, %arg3: memref<60xi32, #tpu.memory_space<smem>>, %arg4: memref<60xi32, #tpu.memory_space<smem>>) -> (i32, i32) {
    %c0_i32 = arith.constant 0 : i32
    %c0_i32_0 = arith.constant 0 : i32
    %c0_i32_1 = arith.constant 0 : i32
    return %c0_i32, %c0_i32_0 : i32, i32
  }
  func.func @transform_7(%arg0: i32, %arg1: memref<60xi32, #tpu.memory_space<smem>>, %arg2: memref<60xi32, #tpu.memory_space<smem>>, %arg3: memref<60xi32, #tpu.memory_space<smem>>, %arg4: memref<60xi32, #tpu.memory_space<smem>>) -> (i32, i32) {
    %c0_i32 = arith.constant 0 : i32
    %c0_i32_0 = arith.constant 0 : i32
    %c0_i32_1 = arith.constant 0 : i32
    return %c0_i32, %c0_i32_0 : i32, i32
  }
  func.func @transform_8(%arg0: i32, %arg1: memref<60xi32, #tpu.memory_space<smem>>, %arg2: memref<60xi32, #tpu.memory_space<smem>>, %arg3: memref<60xi32, #tpu.memory_space<smem>>, %arg4: memref<60xi32, #tpu.memory_space<smem>>) -> (i32, i32) {
    %c0_i32 = arith.constant 0 : i32
    %c0_i32_0 = arith.constant 0 : i32
    %c0_i32_1 = arith.constant 0 : i32
    return %c0_i32, %c0_i32_0 : i32, i32
  }
  func.func @transform_9(%arg0: i32, %arg1: memref<60xi32, #tpu.memory_space<smem>>, %arg2: memref<60xi32, #tpu.memory_space<smem>>, %arg3: memref<60xi32, #tpu.memory_space<smem>>, %arg4: memref<60xi32, #tpu.memory_space<smem>>) -> (i32, i32) {
    %c0_i32 = arith.constant 0 : i32
    %c0_i32_0 = arith.constant 0 : i32
    %c0_i32_1 = arith.constant 0 : i32
    return %c0_i32, %c0_i32_0 : i32, i32
  }
  func.func @transform_10(%arg0: i32, %arg1: memref<60xi32, #tpu.memory_space<smem>>, %arg2: memref<60xi32, #tpu.memory_space<smem>>, %arg3: memref<60xi32, #tpu.memory_space<smem>>, %arg4: memref<60xi32, #tpu.memory_space<smem>>) -> (i32, i32) {
    %c0_i32 = arith.constant 0 : i32
    %c0_i32_0 = arith.constant 0 : i32
    %c0_i32_1 = arith.constant 0 : i32
    return %c0_i32, %c0_i32_0 : i32, i32
  }
  func.func @transform_11(%arg0: i32, %arg1: memref<60xi32, #tpu.memory_space<smem>>, %arg2: memref<60xi32, #tpu.memory_space<smem>>, %arg3: memref<60xi32, #tpu.memory_space<smem>>, %arg4: memref<60xi32, #tpu.memory_space<smem>>) -> (i32, i32) {
    %c0_i32 = arith.constant 0 : i32
    %c0_i32_0 = arith.constant 0 : i32
    %c0_i32_1 = arith.constant 0 : i32
    return %c0_i32, %c0_i32_0 : i32, i32
  }
  func.func @transform_12(%arg0: i32, %arg1: memref<60xi32, #tpu.memory_space<smem>>, %arg2: memref<60xi32, #tpu.memory_space<smem>>, %arg3: memref<60xi32, #tpu.memory_space<smem>>, %arg4: memref<60xi32, #tpu.memory_space<smem>>) -> (i32, i32) {
    %c0_i32 = arith.constant 0 : i32
    %c0_i32_0 = arith.constant 0 : i32
    %c0_i32_1 = arith.constant 0 : i32
    return %c0_i32, %c0_i32_0 : i32, i32
  }
  func.func @transform_13(%arg0: i32, %arg1: memref<60xi32, #tpu.memory_space<smem>>, %arg2: memref<60xi32, #tpu.memory_space<smem>>, %arg3: memref<60xi32, #tpu.memory_space<smem>>, %arg4: memref<60xi32, #tpu.memory_space<smem>>) -> (i32, i32) {
    %c0_i32 = arith.constant 0 : i32
    %c0_i32_0 = arith.constant 0 : i32
    %c0_i32_1 = arith.constant 0 : i32
    return %c0_i32, %c0_i32_0 : i32, i32
  }
  func.func @transform_14(%arg0: i32, %arg1: memref<60xi32, #tpu.memory_space<smem>>, %arg2: memref<60xi32, #tpu.memory_space<smem>>, %arg3: memref<60xi32, #tpu.memory_space<smem>>, %arg4: memref<60xi32, #tpu.memory_space<smem>>) -> (i32, i32) {
    %c0_i32 = arith.constant 0 : i32
    %c0_i32_0 = arith.constant 0 : i32
    %c0_i32_1 = arith.constant 0 : i32
    return %c0_i32, %c0_i32_0 : i32, i32
  }
  func.func @transform_15(%arg0: i32, %arg1: memref<60xi32, #tpu.memory_space<smem>>, %arg2: memref<60xi32, #tpu.memory_space<smem>>, %arg3: memref<60xi32, #tpu.memory_space<smem>>, %arg4: memref<60xi32, #tpu.memory_space<smem>>) -> (i32, i32, i32) {
    %c0_i32 = arith.constant 0 : i32
    %c0_i32_0 = arith.constant 0 : i32
    %c0_i32_1 = arith.constant 0 : i32
    %c0_i32_2 = arith.constant 0 : i32
    return %c0_i32, %c0_i32_0, %c0_i32_1 : i32, i32, i32
  }
}

</mosaic_0001>

<bundles_post_ra>
// kernel: tpu_custom_call.1
= control target key start
LH: loop header
LB: loop body
LE: loop exit
PB: predicated region body
PF: predicated region fallthrough
CT: control target
= control target key end

     0   :  { %s1633_s0 = inlined_call_operand.vmem [shape: s32[60], index: 0, kind: input, shape index: {}]   ;;  %s1634_s4 = inlined_call_operand.hbm [shape: f32[6,6], index: 4, kind: input, shape index: {}]   ;;  %s1635_s5 = inlined_call_operand.hbm [shape: f32[6,16], index: 5, kind: input, shape index: {}]   ;;  %s1636_s6 = inlined_call_operand.hbm [shape: f32[6,32], index: 6, kind: input, shape index: {}]   ;;  %s1637_s7 = inlined_call_operand.hbm [shape: f32[1,32], index: 7, kind: input, shape index: {}]   ;;  %s1638_s8 = inlined_call_operand.vmem [shape: f32[16,32], index: 8, kind: input, shape index: {}]   ;;  %s1639_s9 = inlined_call_operand.hbm [shape: f32[1,32], index: 9, kind: input, shape index: {}]   ;;  %s1640_s10 = inlined_call_operand.vmem [shape: f32[32,32], index: 10, kind: input, shape index: {}]   ;;  %s1641_s11 = inlined_call_operand.hbm [shape: f32[1,32], index: 11, kind: input, shape index: {}]   ;;  %s1642_s12 = inlined_call_operand.vmem [shape: f32[32,32], index: 12, kind: input, shape index: {}]   ;;  %s1643_s13 = inlined_call_operand.hbm [shape: f32[1,32], index: 13, kind: input, shape index: {}]   ;;  %s1644_s14 = inlined_call_operand.vmem [shape: f32[32,16], index: 14, kind: input, shape index: {}]   ;;  %s1645_s15 = inlined_call_operand.vmem [shape: f32[16,16], index: 15, kind: input, shape index: {}]   ;;  %s1646_s16 = inlined_call_operand.vmem [shape: f32[1,16], index: 16, kind: input, shape index: {}]   ;;  %s1647_s17 = inlined_call_operand.vmem [shape: f32[32,8], index: 17, kind: input, shape index: {}]   ;;  %s1648_s18 = inlined_call_operand.vmem [shape: f32[1,8], index: 18, kind: input, shape index: {}]   ;;  %s1649_s19 = inlined_call_operand.hbm [shape: f32[2,1,4], index: 19, kind: output, shape index: {}]   ;;  %s1650_s1 = inlined_call_operand.hbm [shape: s32[60], index: 1, kind: input, shape index: {}]   ;;  %s1651_s2 = inlined_call_operand.hbm [shape: s32[60], index: 2, kind: input, shape index: {}]   ;;  %s1652_s3 = inlined_call_operand.hbm [shape: s32[60], index: 3, kind: input, shape index: {}]  }
   0x1   :  { %1653 = sst [smem:[#allocation29_spill]] %s1633_s0 }
   0x2   :  { %1654 = sst [smem:[#allocation30_spill]] %s1634_s4 }
   0x3   :  { %1655 = sst [smem:[#allocation31_spill]] %s1635_s5 }
   0x4   :  { %1656 = sst [smem:[#allocation32_spill]] %s1636_s6 }
   0x5   :  { %1657 = sst [smem:[#allocation33_spill]] %s1646_s16 }
   0x6   :  { %s1658_s20 = sld [smem:[#allocation29_spill]] }
   0xc   :  { %s24_s16 = sshll.u32 %s1658_s20, 4  ;;  %s25_s16 = int_to_ptr.vmem [resolvable:$true] %s24_s16 }
   0xd   :  { %s1076_s21 = scalar_lea.vmem %s25_s16, 16  ;;  %p1081_p1 = scmp.lt.s32.totalorder %s25_s16, %s25_s16 }
   0xe   :  { %p1077_p0 = scmp.ne.s32.totalorder %s25_s16, %s1076_s21  ;;  %p1082_p2 = scmp.lt.s32.totalorder %s1076_s21, %s1076_s21 }
  0x10   :  { %p1083_p3 = por %p1082_p2, %p1081_p1 }
  0x12   :  { %p1084_p4 = pnand %p1083_p3, %p1077_p0 }
  0x14   :  { %1087 = shalt.err (!%p1084_p4)  }
  0x15   :  { %s1292_s4 = smov [#allocation6]   ;;  %s1293_s22 = smov [#allocation7]  }
  0x16   :  { %27 = dma.vmem_to_smem %s25_s16, 16, %s1292_s4, [#allocation5] }
  0x17   :  { %29 = dma.hbm_to_smem %s1650_s1, 16, %s1293_s22, [#allocation5] }
  0x18   :  { %s1294_s24 = smov [#allocation8]   ;;  %s1295_s26 = smov [#allocation9]  }
  0x19   :  { %31 = dma.hbm_to_smem %s1651_s2, 16, %s1294_s24, [#allocation5] }
  0x1a   :  { %33 = dma.hbm_to_smem %s1652_s3, 16, %s1295_s26, [#allocation5] }
  0x1b   :  { %1276 = dma.done.wait [#allocation5], 64 }
  0x1c   :  { %1277 = vsyncadd [#allocation5], 4294967232 }
  0x1d   :  { %35 = sfence }
  0x1e   :  { %36 = vsyncpa [#allocation11], 0 }
  0x1f   :  { %37 = vsyncpa [#allocation14], 0 }
  0x20   :  { %38 = vsyncpa [#allocation17], 0 }
  0x21   :  { %39 = vsyncpa [#allocation20], 0 }
  0x22   :  { %40 = vsyncpa [#allocation12], 0  ;;  %s1296_s16 = smov [#allocation13]   ;;  %s1297_s29 = smov [#allocation16]  }
  0x23   :  { %s57_s1 = sshll.u32 %s1296_s16, 4  ;;  %s77_s0 = sshll.u32 %s1297_s29, 4  ;;  %s58_s1 = int_to_ptr.vmem [resolvable:$true] %s57_s1  ;;  %s78_s0 = int_to_ptr.vmem [resolvable:$true] %s77_s0 }
  0x24   :  { %s1120_s2 = scalar_lea.vmem %s58_s1, 128  ;;  %p1125_p6 = scmp.lt.s32.totalorder %s58_s1, %s58_s1 }
  0x25   :  { %p1121_p5 = scmp.ne.s32.totalorder %s58_s1, %s1120_s2  ;;  %p1126_p7 = scmp.lt.s32.totalorder %s1120_s2, %s1120_s2 }
  0x27   :  { %p1127_p8 = por %p1126_p7, %p1125_p6 }
  0x29   :  { %p1128_p9 = pnand %p1127_p8, %p1121_p5 }
  0x2b   :  { %1131 = shalt.err (!%p1128_p9)
}
  0x2c   :  { %s1659_s20 = sld [smem:[#allocation31_spill]]  ;;  %s1140_s21 = scalar_lea.vmem %s78_s0, 16 }
  0x2d   :  { %p1141_p10 = scmp.ne.s32.totalorder %s78_s0, %s1140_s21  ;;  %s1144_s4 = scalar_lea.vmem %s78_s0, 32 }
  0x2e   :  { %p1145_p11 = scmp.lt.s32.totalorder %s78_s0, %s78_s0  ;;  %p1146_p12 = scmp.lt.s32.totalorder %s1144_s4, %s1140_s21 }
  0x30   :  { %p1147_p13 = por %p1146_p12, %p1145_p11 }
  0x32   :  { %60 = dma.hbm_to_vmem [thread:$0]  %s1659_s20, 128, %s58_s1, [#allocation14]  }
  0x33   :  { %p1148_p0 = pnand %p1147_p13, %p1141_p10 }
  0x35   :  { %1151 = shalt.err (!%p1148_p0)
}
  0x36   :  { %80 = dma.hbm_to_vmem [thread:$0]  %s1637_s7, 16, %s78_s0, [#allocation17]  }
  0x37   :  { %s1298_s23 = smov [#allocation19]   ;;  %s1299_s25 = smov [#allocation10]  }
  0x38   :  { %s101_s24 = sshll.u32 %s1298_s23, 4  ;;  %s47_s6 = sshll.u32 %s1299_s25, 4  ;;  %s102_s24 = int_to_ptr.vmem [resolvable:$true] %s101_s24  ;;  %s48_s6 = int_to_ptr.vmem [resolvable:$true] %s47_s6 }
  0x39   :  { %s1160_s26 = scalar_lea.vmem %s102_s24, 16  ;;  %s1164_s27 = scalar_lea.vmem %s102_s24, 32 }
  0x3a   :  { %p1161_p1 = scmp.ne.s32.totalorder %s102_s24, %s1160_s26  ;;  %p1165_p2 = scmp.lt.s32.totalorder %s102_s24, %s102_s24 }
  0x3b   :  { %p1166_p3 = scmp.lt.s32.totalorder %s1164_s27, %s1160_s26 }
  0x3d   :  { %p1167_p4 = por %p1166_p3, %p1165_p2 }
  0x3f   :  { %p1168_p5 = pnand %p1167_p4, %p1161_p1 }
  0x41   :  { %1171 = shalt.err (!%p1168_p5)
}
  0x42   :  { %104 = dma.hbm_to_vmem [thread:$0]  %s1641_s11, 16, %s102_s24, [#allocation20]  }
  0x43   :  { %s1180_s1 = scalar_lea.vmem %s48_s6, 128  ;;  %p1185_p7 = scmp.lt.s32.totalorder %s48_s6, %s48_s6 }
  0x44   :  { %p1181_p6 = scmp.ne.s32.totalorder %s48_s6, %s1180_s1  ;;  %p1186_p8 = scmp.lt.s32.totalorder %s1180_s1, %s1180_s1 }
  0x46   :  { %p1187_p9 = por %p1186_p8, %p1185_p7 }
  0x48   :  { %p1188_p10 = pnand %p1187_p9, %p1181_p6 }
  0x4a   :  { %1191 = shalt.err (!%p1188_p10)
}
  0x4b   :  { %s1660_s0 = sld [smem:[#allocation30_spill]]  ;;  %s1300_s2 = smov [#allocation15]  }
  0x4c   :  { %s67_s3 = sshll.u32 %s1300_s2, 4  ;;  %s1301_s30 = smov [#allocation18]   ;;  %s68_s3 = int_to_ptr.vmem [resolvable:$true] %s67_s3 }
  0x4d   :  { %s89_s20 = sshll.u32 %s1301_s30, 4  ;;  %s1200_s21 = scalar_lea.vmem %s68_s3, 128  ;;  %s90_s20 = int_to_ptr.vmem [resolvable:$true] %s89_s20 }
  0x4e   :  { %p1201_p11 = scmp.ne.s32.totalorder %s68_s3, %s1200_s21  ;;  %p1205_p12 = scmp.lt.s32.totalorder %s68_s3, %s68_s3 }
  0x4f   :  { %p1206_p13 = scmp.lt.s32.totalorder %s1200_s21, %s1200_s21 }
  0x51   :  { %50 = dma.hbm_to_vmem [thread:$0]  %s1660_s0, 128, %s48_s6, [#allocation11]  }
  0x52   :  { %p1207_p0 = por %p1206_p13, %p1205_p12 }
  0x54   :  { %p1208_p1 = pnand %p1207_p0, %p1201_p11 }
  0x56   :  { %1211 = shalt.err (!%p1208_p1)
}
  0x57   :  { %s1661_s22 = sld [smem:[#allocation32_spill]]  ;;  %s1220_s5 = scalar_lea.vmem %s90_s20, 16 }
  0x58   :  { %p1221_p2 = scmp.ne.s32.totalorder %s90_s20, %s1220_s5  ;;  %s1224_s23 = scalar_lea.vmem %s90_s20, 32 }
  0x59   :  { %p1225_p3 = scmp.lt.s32.totalorder %s90_s20, %s90_s20  ;;  %p1226_p4 = scmp.lt.s32.totalorder %s1224_s23, %s1220_s5 }
  0x5b   :  { %p1227_p5 = por %p1226_p4, %p1225_p3 }
  0x5d   :  { %70 = dma.hbm_to_vmem [thread:$0]  %s1661_s22, 128, %s68_s3, [#allocation14]  }
  0x5e   :  { %p1228_p6 = pnand %p1227_p5, %p1221_p2 }
  0x60   :  { %1231 = shalt.err (!%p1228_p6)
}
  0x61   :  { %92 = dma.hbm_to_vmem [thread:$0]  %s1639_s9, 16, %s90_s20, [#allocation17]  }
  0x62   :  { %s1302_s6 = smov [#allocation21]  }
  0x63   :  { %s113_s26 = sshll.u32 %s1302_s6, 4  ;;  %s114_s26 = int_to_ptr.vmem [resolvable:$true] %s113_s26 }
  0x64   :  { %s1240_s27 = scalar_lea.vmem %s114_s26, 16  ;;  %s1244_s28 = scalar_lea.vmem %s114_s26, 32 }
  0x65   :  { %p1241_p7 = scmp.ne.s32.totalorder %s114_s26, %s1240_s27  ;;  %p1245_p8 = scmp.lt.s32.totalorder %s114_s26, %s114_s26 }
  0x66   :  { %p1246_p9 = scmp.lt.s32.totalorder %s1244_s28, %s1240_s27 }
  0x68   :  { %p1247_p10 = por %p1246_p9, %p1245_p8 }
  0x6a   :  { %p1248_p11 = pnand %p1247_p10, %p1241_p7 }
  0x6c   :  { %1251 = shalt.err (!%p1248_p11)
}
  0x6d   :  { %116 = dma.hbm_to_vmem [thread:$0]  %s1643_s13, 16, %s114_s26, [#allocation20]  }
  0x6e   :  { %1278 = dma.done.wait [#allocation11], 128  }
  0x6f   :  { %1279 = vsyncadd [#allocation11], 4294967168 }
  0x70   :  { %1280 = dma.done.wait [#allocation14], 256  }
  0x71   :  { %1281 = vsyncadd [#allocation14], 4294967040 }
  0x72   :  { %1282 = dma.done.wait [#allocation17], 32  }
  0x73   :  { %1283 = vsyncadd [#allocation17], 4294967264 }
  0x74   :  { %1284 = dma.done.wait [#allocation20], 32  }
  0x75   :  { %1285 = vsyncadd [#allocation20], 4294967264  ;;  %v1303_v0 = vmov 0.0   ;;  %vm1304_vm0 = vmmov 0   ;;  %vm238_vm1 = vcmask 128000   ;;  %vm161_vm2 = vcmask 1045504  }
  0x76   :  { %972 = vmatprep.subr.mxu0 %v1303_v0  ;;  %974 = vmatprep.mubr.msk.f32.mxu0 %vm1304_vm0, %v1303_v0  ;;  %vm157_vm3 = vcmask 48128   ;;  %v237_v1 = vld [vmem:[#allocation13] sm:$0x3f]  ;;  %v149_v2 = vld [vmem:[#allocation15] sm:$0x3f]  ;;  %v240_v4 = vlaneseq  ;;  %vm235_vm4 = vcmask 259072  }
  0x77   :  { %v148_v3 = vld [vmem:[#allocation10] sm:$0x3f]  ;;  %239 = vst.msk [vmem:[#allocation3] sm:$0x3f] %vm238_vm1, %v237_v1  ;;  %973 = vmatpush3.msk.msra.mxu0 %vm161_vm2, %v149_v2  ;;  %v930_v7 = vld [vmem:[#allocation16] ss:$0 sm:$0xff] }
  0x78   :  { %975 = vmatmul.mubr.msk.f32.vlgmr.msra.gmra.mxu0 %vm157_vm3, %v148_v3  ;;  %v1447_v5 = vshrl.u32 %v240_v4, 7  ;;  %vm244_vm5 = vcmask 261120   ;;  %vm246_vm6 = vcmask 254976   ;;  %s1474_s9 = smov 0  }
  0x7a   :  { %v1450_v6 = vadd.s32 8, %v1447_v5  ;;  %v1453_v8 = vsub.s32 0, %v1447_v5  ;;  %v250_v9 = vsub.s32 1, %v1447_v5  ;;  %v257_v10 = vsub.s32 2, %v1447_v5 }
  0x7b   :  { %v264_v11 = vsub.s32 3, %v1447_v5  ;;  %v271_v13 = vsub.s32 4, %v1447_v5  ;;  %v278_v14 = vsub.s32 5, %v1447_v5 }
 0x138   :  { %v231_v12 = vpop.f32.mrf.mxu0 }
 0x139   :  { %v232_v15 = vadd.f32 %v930_v7, %v231_v12 }
 0x13a   :  { %v976_v16 = vpop.f32.mrf.mxu0 }
 0x13b   :  { %236 = vst.msk [vmem:[#allocation4] sm:$0x3f] %vm235_vm4, %v232_v15  ;;  %v243_v17 = vrot.slane %v232_v15, %v1453_v8  ;;  %v251_v18 = vrot.slane %v232_v15, %v250_v9  ;;  %v258_v19 = vrot.slane %v232_v15, %v257_v10  ;;  %v265_v20 = vrot.slane %v232_v15, %v264_v11 }
 0x13c   :  { %v272_v21 = vrot.slane %v232_v15, %v271_v13  ;;  %v279_v22 = vrot.slane %v232_v15, %v278_v14 }
 0x13d   :  { %245 = vst.msk [vmem:[#allocation2] sm:$0xff] %vm244_vm5, %v243_v17  ;;  %253 = vst.msk [vmem:[#allocation2 + $0x10] sm:$0xff] %vm244_vm5, %v251_v18 }
 0x13e   :  { %247 = vst.msk [vmem:[#allocation2 + $0x8] sm:$0x3] %vm246_vm6, %v243_v17  ;;  %254 = vst.msk [vmem:[#allocation2 + $0x18] sm:$0x3] %vm246_vm6, %v251_v18 }
 0x13f   :  { %260 = vst.msk [vmem:[#allocation2 + $0x20] sm:$0xff] %vm244_vm5, %v258_v19  ;;  %267 = vst.msk [vmem:[#allocation2 + $0x30] sm:$0xff] %vm244_vm5, %v265_v20 }
 0x140   :  { %261 = vst.msk [vmem:[#allocation2 + $0x28] sm:$0x3] %vm246_vm6, %v258_v19  ;;  %268 = vst.msk [vmem:[#allocation2 + $0x38] sm:$0x3] %vm246_vm6, %v265_v20 }
 0x141   :  { %274 = vst.msk [vmem:[#allocation2 + $0x40] sm:$0xff] %vm244_vm5, %v272_v21  ;;  %281 = vst.msk [vmem:[#allocation2 + $0x50] sm:$0xff] %vm244_vm5, %v279_v22 }
 0x142   :  { %275 = vst.msk [vmem:[#allocation2 + $0x48] sm:$0x3] %vm246_vm6, %v272_v21  ;;  %282 = vst.msk [vmem:[#allocation2 + $0x58] sm:$0x3] %vm246_vm6, %v279_v22 }
 0x143 LB: > { %v303_v23 = vld [vmem:[%s1638_s8 + $0x8] sm:$0xff]  ;;  %v1305_v24 = vmov 0.0   ;;  %v302_v25 = vld [vmem:[%s1638_s8] sm:$0xff]  ;;  %vm1306_vm7 = vmmov 0   ;;  %v382_v26 = vld [vmem:[%s1640_s10 + $0x18] sm:$0xff]  ;;  %s293_s30 = sld [smem:[#allocation7 + %s1290_s9]]  ;;  %s1290_s9 = sphi %s1474_s9, %s291_s9  }
 0x144   : > { %977 = vmatprep.subr.mxu1 %v1305_v24  ;;  %981 = vmatprep.mubr.msk.f32.mxu1 %vm1306_vm7, %v1305_v24  ;;  %s1495_s20 = sld [smem:[#allocation6 + %s1290_s9]]  ;;  %vm305_vm8 = vcmask 130048   ;;  %v381_v28 = vld [vmem:[%s1640_s10 + $0x10] sm:$0xff]  ;;  %v380_v29 = vld [vmem:[%s1640_s10 + $0x8] sm:$0xff]  ;;  %v379_v31 = vld [vmem:[%s1640_s10] sm:$0xff]  ;;  %vm490_vm10 = vcmask 1041408  }
 0x145   : > { %978 = vmatpush3.msra.mxu1 %v303_v23  ;;  %995 = vmatprep.subr.mxu0 %v1305_v24  ;;  %v304_v34 = vld [vmem:[#allocation18] sm:$0x1]  ;;  %v935_v37 = vld [vmem:[#allocation19] ss:$0 sm:$0xff]  ;;  %v530_v47 = vld [vmem:[%s1642_s12 + $0x18] sm:$0xff]  ;;  %s295_s3 = sld [smem:[#allocation9 + %s1290_s9]] }
 0x146   : > { %979 = vmatprep.subr.mxu1 %v1305_v24  ;;  %1003 = vmatprep.mubr.msk.f32.mxu0 %vm1306_vm7, %v1305_v24  ;;  %v529_v48 = vld [vmem:[%s1642_s12 + $0x10] sm:$0xff]  ;;  %v528_v49 = vld [vmem:[%s1642_s12 + $0x8] sm:$0xff]  ;;  %v527_v50 = vld [vmem:[%s1642_s12] sm:$0xff]  ;;  %s294_s27 = sld [smem:[#allocation8 + %s1290_s9]]  ;;  %vm768_vm12 = vcmask 253952   ;;  %vm772_vm15 = vcmask 122880  }
 0x147   : > { %980 = vmatpush3.msra.mxu1 %v302_v25  ;;  %996 = vmatpush3.msra.mxu0 %v530_v47  ;;  %v610_v51 = vld [vmem:[%s1645_s15 + $0x8] sm:$0xff]  ;;  %s1662_s13 = sld [smem:[#allocation33_spill]] }
 0x148   : > { %984 = vmatprep.subr.mxu1 %v382_v26  ;;  %997 = vmatprep.subr.mxu0 %v1305_v24 }
 0x149   : > { %s296_s21 = scalar_lea.vmem [#allocation3], %s293_s30  ;;  %998 = vmatpush3.msra.mxu0 %v529_v48 }
 0x14a   : > { %v1499_v27 = vld [vmem:[%s296_s21] sm:$0x1]  ;;  %s933_s22 = sshll.u32 %s1495_s20, 4  ;;  %999 = vmatprep.subr.mxu0 %v1305_v24  ;;  %s767_s28 = scalar_lea.vmem [#allocation4], %s1495_s20 }
 0x14b   : > { %982 = vmatmul.mubr.msk.f32.vlgmr.msra.gmra.mxu1 %vm305_vm8, %v1499_v27  ;;  %s1510_s24 = scalar_lea.vmem [#allocation2], %s933_s22  ;;  %1000 = vmatpush3.msra.mxu0 %v528_v49  ;;  %v485_v52 = vstv %s295_s3  ;;  %s923_s20 = scalar_lea.vmem [#allocation3], %s1290_s9 }
 0x14c   : > { %985 = vmatpush3.msra.mxu1 %v382_v26  ;;  %v1513_v30 = vld [vmem:[%s1510_s24] sm:$0xff]  ;;  %v1521_v32 = vld [vmem:[%s1510_s24 + $0x8] sm:$0x3]  ;;  %1001 = vmatprep.subr.mxu0 %v1305_v24  ;;  %vm487_vm9 = vcmp.lt.s32.totalorder %v1450_v6, %v485_v52  ;;  %vm486_vm11 = vcmp.lt.s32.totalorder %v1447_v5, %v485_v52  ;;  %s291_s9 = sadd.s32 1, %s1290_s9  }
 0x14d   : > { %986 = vmatprep.subr.mxu1 %v381_v28  ;;  %992 = vmatprep.mubr.msk.f32.mxu1 %vm244_vm5, %v1513_v30  ;;  %p288_p12 = scmp.ge.s32.totalorder %s291_s9, 60  }
 0x14e   : > { %987 = vmatpush3.msra.mxu1 %v381_v28  ;;  %1002 = vmatpush3.msra.mxu0 %v527_v50  ;;  %vm860_vm1 = vcmask (%p288_p12), 24576  }
 0x14f   : > { %988 = vmatprep.subr.mxu1 %v380_v29  ;;  %1013 = vmatprep.subr.mxu0 %v1305_v24 }
 0x150   : > { %989 = vmatpush3.msra.mxu1 %v380_v29 }
 0x151   : > { %990 = vmatprep.subr.mxu1 %v379_v31 }
 0x152   : > { %991 = vmatpush3.msra.mxu1 %v379_v31 }
 0x153   : > { %993 = vmatmul.mubr.msk.f32.vlgmr.msra.gmra.mxu1 %vm244_vm5, %v1521_v32  ;;  %1006 = vmatprep.subr.mxu1 %v1305_v24 }
 0x154   : > { %1010 = vmatprep.mubr.msk.f32.mxu1 %vm1306_vm7, %v1305_v24  ;;  %1007 = vmatpush3.msra.mxu1 %v610_v51 }
 0x155   : > { %1008 = vmatprep.subr.mxu1 %v1305_v24 }
 0x20b   : > { %v375_v33 = vpop.f32.mrf.mxu1 }
 0x20c   : > { %v376_v36 = vadd.f32 %v375_v33, %v304_v34 }
 0x20d   : > { %v983_v35 = vpop.f32.mrf.mxu1 }
 0x20e   : > { %v474_v39 = vrot.slane %v376_v36, %v1453_v8 }
 0x213   : > { %v994_v38 = vpop.f32.mrf.mxu1 }
 0x214   : > { %v468_v40 = vadd.f32 %v994_v38, %v935_v37 }
 0x215   : > { %v462_v41 = vpop.f32.mrf.mxu1 }
 0x216   : > { %v463_v42 = vadd.f32 %v935_v37, %v462_v41  ;;  %v476_v43 = vmul.f32 %v474_v39, %v468_v40  ;;  %v607_v40 = vld [vmem:[%s1644_s14 + $0x10] sm:$0xff]  ;;  %v609_v41 = vld [vmem:[%s1645_s15] sm:$0xff]  ;;  %s1307_s15 = smov (%p288_p12), 124  }
 0x217   : > { %1009 = vmatpush3.msra.mxu1 %v609_v41 }
 0x218   : > { %v480_v44 = vsel %vm246_vm6, %v476_v43, 0.0  ;;  %v475_v45 = vmul.f32 %v474_v39, %v463_v42  ;;  %v608_v39 = vld [vmem:[%s1644_s14 + $0x18] sm:$0xff]  ;;  %v606_v42 = vld [vmem:[%s1644_s14 + $0x8] sm:$0xff]  ;;  %1011 = vmatmul.mubr.msk.f32.vlgmr.msra.gmra.mxu1 %vm305_vm8, %v1499_v27  ;;  %v605_v43 = vld [vmem:[%s1644_s14] sm:$0xff] }
 0x219   : > { %481 = vadd.xlane.f32.xlu0 %v480_v44  ;;  %v531_v44 = vld [vmem:[#allocation21] sm:$0x1] }
 0x21a   : > { %v477_v46 = vsel %vm244_vm5, %v475_v45, 0.0  ;;  %v756_v45 = vstv %s294_s27 }
 0x21b   : > { %vm757_vm13 = vcmp.eq.s32.totalorder %v1447_v5, %v756_v45  ;;  %vm758_vm14 = vcmp.eq.s32.totalorder %v1450_v6, %v756_v45  ;;  %v783_v5 = vld [vmem:[%s1647_s17 + $0x8] sm:$0xff] (%p288_p12) }
 0x21d   : > { %478 = vadd.xlane.f32.xlu0 %v477_v46 }
 0x2a2   : > { %v482_v53 = vpop.xlane.xlu0 %481 }
 0x2a3   : > { %v484_v54 = vmul.f32 0.17677669, %v482_v53  ;;  %v754_v53 = vld [vmem:[%s1662_s13] sm:$0x1] }
 0x2a5   : > { %v489_v55 = vsel %vm487_vm9, %v484_v54, -1e+30 }
 0x2a6   : > { %v479_v56 = vpop.xlane.xlu0 %478  ;;  %v491_v58 = vsel %vm490_vm10, %v489_v55, -inf }
 0x2a7   : > { %v483_v57 = vmul.f32 0.17677669, %v479_v56 }
 0x2a9   : > { %v488_v59 = vsel %vm486_vm11, %v483_v57, -1e+30 }
 0x2aa   : > { %v492_v60 = vmax.f32 %v488_v59, %v491_v58  ;;  %v782_v58 = vld [vmem:[%s1647_s17] sm:$0xff] (%p288_p12) }
 0x2ac   : > { %v493_v61 = vrot.slane %v492_v60, 4 }
 0x2ae   : > { %v494_v62 = vmax.f32 %v492_v60, %v493_v61 }
 0x2b0   : > { %v495_v63 = vrot.slane %v494_v62, 2 }
 0x2b2   : > { %v496_v1 = vmax.f32 %v494_v62, %v495_v63 }
 0x2b4   : > { %v497_v2 = vrot.slane %v496_v1, 1 }
 0x2b6   : > { %v498_v3 = vmax.f32 %v496_v1, %v497_v2  ;;  %v786_v1 = vld [vmem:[%s1648_s18] sm:$0x1] (%p288_p12) }
 0x2b8   : > { %v499_v4 = vsub.f32 %v488_v59, %v498_v3  ;;  %v500_v7 = vsub.f32 %v489_v55, %v498_v3 }
 0x2ba   : > { %v501_v9 = vmul.f32 1.442695, %v499_v4  ;;  %v503_v10 = vmul.f32 1.442695, %v500_v7 }
 0x2bc   : > { %1062 = vpow2.f32 %v501_v9 }
 0x2bd   : > { %1064 = vpow2.f32 %v503_v10 }
 0x2c9   : > { %v1063_v11 = vpop.eup %1062 }
 0x2ca   : > { %v1065_v12 = vpop.eup %1064 }
 0x2cb   : > { %v505_v13 = vsel %vm490_vm10, %v1065_v12, 0.0 }
 0x2cc   : > { %v506_v14 = vadd.f32 %v1063_v11, %v505_v13 }
 0x2ce   : > { %v507_v15 = vrot.slane %v506_v14, 4 }
 0x2d0   : > { %v508_v16 = vadd.f32 %v507_v15, %v506_v14 }
 0x2d2   : > { %v509_v17 = vrot.slane %v508_v16, 2 }
 0x2d4   : > { %v510_v18 = vadd.f32 %v509_v17, %v508_v16 }
 0x2d6   : > { %v511_v19 = vrot.slane %v510_v18, 1 }
 0x2d8   : > { %v512_v20 = vadd.f32 %v511_v19, %v510_v18  ;;  %v677_v50 = vpop.f32.mrf.mxu1 }
 0x2da   : > { %1066 = vrcp.f32 %v512_v20  ;;  %v1012_v51 = vpop.f32.mrf.mxu1 }
 0x2e7   : > { %v1067_v21 = vpop.eup %1066 }
 0x2e8   : > { %v514_v22 = vmul.f32 %v1067_v21, %v1063_v11  ;;  %v515_v23 = vmul.f32 %v1067_v21, %v1065_v12 }
 0x2ea   : > { %v516_v25 = vmul.f32 %v514_v22, %v1513_v30  ;;  %v517_v26 = vmul.f32 %v515_v23, %v1521_v32 }
 0x2ec   : > { %v518_v28 = vsel %vm244_vm5, %v516_v25, 0.0  ;;  %v519_v29 = vsel %vm246_vm6, %v517_v26, 0.0 }
 0x2ed   : > { %v520_v31 = vadd.f32 %v519_v29, %v518_v28 }
 0x2ef   : > { %v521_v33 = vrot.slane %v520_v31, 4 }
 0x2f1   : > { %v522_v34 = vadd.f32 %v521_v33, %v520_v31 }
 0x2f3   : > { %v523_v35 = vrot.slane %v522_v34, 2 }
 0x2f5   : > { %v524_v36 = vadd.f32 %v523_v35, %v522_v34 }
 0x2f7   : > { %v525_v37 = vrot.slane %v524_v36, 1 }
 0x2f9   : > { %v526_v38 = vadd.f32 %v525_v37, %v524_v36 }
 0x2fb   : > { %1004 = vmatmul.mubr.msk.f32.vlgmr.msra.gmra.mxu0 %vm244_vm5, %v526_v38 }
 0x2fc   : > { %1014 = vmatpush3.msra.mxu0 %v608_v39  ;;  %1021 = vmatprep.mubr.msk.f32.mxu0 %vm1306_vm7, %v1305_v24 }
 0x2fd   : > { %1015 = vmatprep.subr.mxu0 %v1305_v24 }
 0x2fe   : > { %1016 = vmatpush3.msra.mxu0 %v607_v40 }
 0x2ff   : > { %1017 = vmatprep.subr.mxu0 %v1305_v24 }
 0x300   : > { %1018 = vmatpush3.msra.mxu0 %v606_v42 }
 0x301   : > { %1019 = vmatprep.subr.mxu0 %v1305_v24 }
 0x302   : > { %1020 = vmatpush3.msra.mxu0 %v605_v43 }
 0x303   :  { %1024 = vmatprep.subr.mxu0 (%p288_p12), %v1303_v0 }
 0x3bb   : > { %v601_v46 = vpop.f32.mrf.mxu0 }
 0x3bc   : > { %v602_v47 = vadd.f32 %v601_v46, %v531_v44 }
 0x3bd   : > { %v1005_v27 = vpop.f32.mrf.mxu0 }
 0x3be   : > { %v762_v24 = vrot.slane %v602_v47, %v1453_v8  ;;  %769 = vst.msk [vmem:[%s767_s28] sm:$0x1] %vm768_vm12, %v602_v47  ;;  %1022 = vmatmul.mubr.msk.f32.vlgmr.msra.gmra.mxu0 %vm244_vm5, %v602_v47 }
 0x3bf   :  { %1032 = vmatprep.mubr.msk.f32.mxu0 (%p288_p12), %vm1304_vm0, %v1303_v0  ;;  %vm875_vm0 = vcmask (%p288_p12), 57376  }
 0x3c0   : > { %v763_v48 = vsel %vm757_vm13, %v762_v24, %v1513_v30  ;;  %v764_v49 = vsel %vm758_vm14, %v762_v24, %v1521_v32  ;;  %v785_v30 = vld [vmem:[%s1647_s17 + $0x18] sm:$0xff] (%p288_p12)  ;;  %v784_v32 = vld [vmem:[%s1647_s17 + $0x10] sm:$0xff] (%p288_p12)  ;;  %s1308_s17 = smov (%p288_p12), [#allocation22]  }
 0x3c1   : > { %765 = vst.msk [vmem:[%s1510_s24] sm:$0xff] %vm244_vm5, %v763_v48  ;;  %1025 = vmatpush3.msra.mxu0 (%p288_p12), %v785_v30  ;;  %s904_s18 = sshll.u32 (%p288_p12), %s1308_s17, 4  ;;  %s905_s18 = int_to_ptr.vmem [resolvable:$true] %s904_s18 }
 0x3c2   : > { %766 = vst.msk [vmem:[%s1510_s24 + $0x8] sm:$0x3] %vm246_vm6, %v764_v49  ;;  %1026 = vmatprep.subr.mxu0 (%p288_p12), %v1303_v0  ;;  %s1252_s3 = scalar_lea.vmem (%p288_p12), %s905_s18, 32  ;;  %p1257_p0 = scmp.lt.s32.totalorder (%p288_p12), %s905_s18, %s905_s18 }
 0x3c3   :  { %1027 = vmatpush3.msra.mxu0 (%p288_p12), %v784_v32  ;;  %p1253_p13 = scmp.ne.s32.totalorder (%p288_p12), %s905_s18, %s1252_s3  ;;  %p1258_p1 = scmp.lt.s32.totalorder (%p288_p12), %s1252_s3, %s1252_s3 }
 0x3c4   :  { %1028 = vmatprep.subr.mxu0 (%p288_p12), %v1303_v0 }
 0x3c5   :  { %v774_v57 = vld [vmem:[#allocation4] sm:$0x3f] (%p288_p12)  ;;  %1029 = vmatpush3.msra.mxu0 (%p288_p12), %v783_v5  ;;  %p1259_p2 = por (%p288_p12), %p1258_p1, %p1257_p0 }
 0x3c6   :  { %v775_v6 = vsel (%p288_p12), %vm235_vm4, %v774_v57, 0.0  ;;  %1030 = vmatprep.subr.mxu0 (%p288_p12), %v1303_v0 }
 0x3c7   :  { %v776_v8 = vrot.slane (%p288_p12), %v775_v6, 4  ;;  %1031 = vmatpush3.msra.mxu0 (%p288_p12), %v782_v58  ;;  %p1260_p3 = pnand (%p288_p12), %p1259_p2, %p1253_p13 }
 0x3c9   :  { %v777_v59 = vadd.f32 (%p288_p12), %v776_v8, %v775_v6 }
 0x3cb   :  { %v778_v60 = vrot.slane (%p288_p12), %v777_v59, 2 }
 0x3cd   :  { %v779_v61 = vadd.f32 (%p288_p12), %v778_v60, %v777_v59 }
 0x3cf   :  { %v780_v62 = vrot.slane (%p288_p12), %v779_v61, 1 }
 0x3d1   :  { %v781_v63 = vadd.f32 (%p288_p12), %v780_v62, %v779_v61 }
 0x3d3   :  { %1033 = vmatmul.mubr.msk.f32.vlgmr.msra.gmra.mxu0 (%p288_p12), %vm244_vm5, %v781_v63 }
 0x47e   : > { %v750_v52 = vpop.f32.mrf.mxu0 }
 0x47f   : > { %v751_v54 = vadd.f32 %v750_v52, %v677_v50  ;;  %290 = sbr.rel (!%p288_p12) target bundleno = 323 (0x143), region = 125 }
 0x480   : > { %v1023_v55 = vpop.f32.mrf.mxu0 }
 0x481   : > { %v755_v56 = vadd.f32 %v754_v53, %v751_v54 }
 0x483   : > { %941 = vst.msk [vmem:[%s923_s20 + $0x6] sm:$0x1] %vm772_vm15, %v755_v56 }
 0x493   :  { %v856_v2 = vpop.f32.mrf.mxu0 }
 0x494   :  { %v857_v3 = vadd.f32 %v856_v2, %v786_v1 }
 0x495   :  { %v1034_v4 = vpop.f32.mrf.mxu0 }
 0x496   :  { %v876_v7 = vsel %vm875_vm0, %v857_v3, -inf  ;;  %v861_v9 = vsel %vm860_vm1, %v857_v3, -inf }
 0x497   :  { %877 = vmax.xlane.f32.xlu0 %v876_v7  ;;  %862 = vmax.xlane.f32.xlu1 %v861_v9 }
 0x520   :  { %v878_v0 = vpop.xlane.xlu0 %877  ;;  %v863_v13 = vpop.xlane.xlu1 %862 }
 0x521   :  { %v879_v10 = vsub.f32 %v857_v3, %v878_v0  ;;  %v864_v14 = vsub.f32 %v857_v3, %v863_v13 }
 0x523   :  { %v880_v11 = vmul.f32 1.442695, %v879_v10  ;;  %v865_v15 = vmul.f32 1.442695, %v864_v14 }
 0x525   :  { %1068 = vpow2.f32 %v880_v11 }
 0x526   :  { %1070 = vpow2.f32 %v865_v15 }
 0x532   :  { %v1069_v12 = vpop.eup %1068 }
 0x533   :  { %883 = vrot.lane.b32.xlu0 %v1069_v12, %s1307_s15  ;;  %v1071_v18 = vpop.eup %1070 }
 0x534   :  { %v867_v19 = vsel %vm860_vm1, %v1071_v18, 0.0 }
 0x5a5   :  { %v884_v16 = vpop.permute.xlu0 %883 }
 0x5a6   :  { %v886_v17 = vsel %vm860_vm1, %v884_v16, 0.0 }
 0x5a7   :  { %887 = vadd.xlane.f32.xlu1 %v886_v17 }
 0x5ab   :  { %868 = vadd.xlane.f32.xlu1 %v867_v19 }
 0x630   :  { %v888_v20 = vpop.xlane.xlu1 %887 }
 0x631   :  { %1072 = vlog2.f32 %v888_v20 }
 0x634   :  { %v869_v21 = vpop.xlane.xlu1 %868 }
 0x635   :  { %1074 = vlog2.f32 %v869_v21 }
 0x63e   :  { %v1073_v22 = vpop.eup %1072 }
 0x63f   :  { %v890_v23 = vmul.f32 0.6931472, %v1073_v22 }
 0x641   :  { %v891_v25 = vadd.f32 %v890_v23, %v878_v0 }
 0x642   :  { %v1075_v26 = vpop.eup %1074 }
 0x643   :  { %v871_v28 = vmul.f32 0.6931472, %v1075_v26  ;;  %v892_v29 = vsub.f32 %v857_v3, %v891_v25 }
 0x645   :  { %v872_v31 = vadd.f32 %v871_v28, %v863_v13  ;;  %894 = vrot.lane.b32.xlu1 %v892_v29, %s1307_s15 }
 0x647   :  { %v873_v33 = vsub.f32 %v857_v3, %v872_v31 }
 0x649   :  { %874 = vst.msk [vmem:[#allocation22] sm:$0x1] %vm860_vm1, %v873_v33 }
 0x6b7   :  { %v895_v34 = vpop.permute.xlu1 %894 }
 0x6b8   :  { %898 = vst.msk [vmem:[#allocation22 + $0x1] sm:$0x1] %vm860_vm1, %v895_v34 }
 0x6b9   :  { %1263 = shalt.err (!%p1260_p3)
}
 0x6ba   :  { %s1309_s30 = smov 16   ;;  %s1310_s21 = smov 1  }
 0x6bb   :  { %910 = dma.vmem_to_hbm [thread:$0]  %s905_s18, 32, %s1649_s19, [#allocation12], %s1309_s30, %s1309_s30, %s1310_s21  }
 0x6bc   :  { %1286 = dma.done.wait [#allocation12], 32  }
 0x6bd   :  { %1287 = vsyncadd [#allocation12], 4294967264 }
 0x6be   :  { %914 = vsyncpa [#allocation11], 1 }
 0x6bf   :  { %915 = vsyncpa [#allocation14], 1 }
 0x6c0   :  { %916 = vsyncpa [#allocation17], 1 }
 0x6c1   :  { %917 = vsyncpa [#allocation20], 1 }
 0x6c2   :  { %918 = vsyncpa [#allocation12], 1 }

</bundles_post_ra>
